<compile_context>
chip_gen: v7x
topology: tpu7x:2x2x1
jax: 0.10.0
libtpu: 0.0.40
codegen_flags: <defaults>
</compile_context>

<pallas_src>
from functools import partial

import jax
import jax.numpy as jnp
from jax import lax
from jax.experimental import pallas as pl
from jax.experimental.pallas import tpu as pltpu

EPS = 1e-5


def _round_up(x, m):
    return ((x + m - 1) // m) * m


def _block_kernel(x_ref, mmat_ref, w_ref, b_ref, o_ref):
    """Fused LayerNorm + mixer + residual on a packed (TILE, Cp) tile.

    mmat_ref : (Cp, Cp) block-diag(ones/C)            -> per-token segment mean
    w_ref    : (Cp, Cp) block-diag(diag(gamma)@(I+W)) -> folded affine + residual
    b_ref    : (1, Cp)  tiled  (beta@(I+W) + b)
    """
    x = x_ref[...].astype(jnp.float32)
    mmat = mmat_ref[...]

    # Both stats matmuls depend only on x -> issued back-to-back (one MXU<->VPU
    # round trip removed from the per-tile critical path).  Block-diag matmuls
    # keep everything lane-dense and ride the otherwise-idle MXU.
    mean = jnp.dot(x, mmat, preferred_element_type=jnp.float32)
    ex2 = jnp.dot(x * x, mmat, preferred_element_type=jnp.float32)
    var = jnp.maximum(ex2 - mean * mean, 0.0)       # clamp cancellation noise
    xn = (x - mean) * lax.rsqrt(var + EPS)

    out = jnp.dot(xn, w_ref[...], preferred_element_type=jnp.float32) + b_ref[...]
    o_ref[...] = out.astype(o_ref.dtype)


def block_forward(hidden_states, gamma, beta, w_mix, b_mix, *, shape, tile_m=4096):
    """hidden_states: (N, L, C) with L == h*w for the given spatial `shape` (t=1)."""
    h, w = shape
    n, seq_len, c = hidden_states.shape
    assert seq_len == h * w, "sequence length must equal h*w (t=1 for spatial_dims=2)"

    # --- Fold LN affine, residual and mixer bias into a single affine (once).
    #   out = LN(x) + LN(x) @ W + b
    #       = xn @ (diag(gamma) @ (I + W)) + (beta @ (I + W) + b)
    iw = jnp.eye(c, dtype=jnp.float32) + w_mix.astype(jnp.float32)
    w_fold = gamma.astype(jnp.float32)[:, None] * iw                    # (C, C)
    b_fold = beta.astype(jnp.float32) @ iw + b_mix.astype(jnp.float32)  # (C,)

    tokens = n * seq_len

    # --- Lane packing: p tokens per 128-lane row when C divides 128.  Reduce p
    # until it divides the token count so packing is a pure metadata reshape
    # (no host-side pad / unpad HBM passes).
    p = 128 // c if (c < 128 and 128 % c == 0) else 1
    while p > 1 and tokens % p:
        p //= 2
    cp = p * c
    # TODO(synk): if C < 128 and does not divide 128, output stores are lane-sparse
    #             (masked vst); padding the weight columns to 128 would fix that but
    #             needs an extra output unpack pass, so it is not done here.

    if p > 1:
        eye_p = jnp.eye(p, dtype=jnp.float32)
        w_packed = jnp.kron(eye_p, w_fold)                                   # (Cp, Cp)
        mmat = jnp.kron(eye_p, jnp.full((c, c), 1.0 / c, dtype=jnp.float32)) # (Cp, Cp)
        b_packed = jnp.tile(b_fold, p).reshape(1, cp)                        # (1, Cp)
    else:
        w_packed = w_fold
        mmat = jnp.full((c, c), 1.0 / c, dtype=jnp.float32)
        b_packed = b_fold.reshape(1, c)

    rows = tokens // p                               # exact: no padding anywhere
    x_packed = hidden_states.reshape(rows, cp)       # contiguous, metadata-only

    # --- Row-tile selection: as large as possible (amortize ~0.35us/grid-step on
    # this HBM-bound op), but at least 2 grid steps so both v7x TensorCores get
    # work, rounded to the dtype's sublane packing.  Ragged last tile is handled
    # by Pallas (partial block), so `tile` need not divide `rows`.
    itemsize = jnp.dtype(hidden_states.dtype).itemsize
    sublane = {4: 8, 2: 16, 1: 32}.get(itemsize, 8)
    tile = max(sublane, min(tile_m, _round_up(pl.cdiv(rows, 2), sublane)))
    grid = pl.cdiv(rows, tile)

    out_packed = pl.pallas_call(
        _block_kernel,
        out_shape=jax.ShapeDtypeStruct((rows, cp), hidden_states.dtype),
        grid_spec=pltpu.PrefetchScalarGridSpec(
            num_scalar_prefetch=0,
            grid=(grid,),
            in_specs=[
                pl.BlockSpec((tile, cp), lambda i: (i, 0)),   # packed x tile
                pl.BlockSpec((cp, cp), lambda i: (0, 0)),     # mean matrix
                pl.BlockSpec((cp, cp), lambda i: (0, 0)),     # folded mixer weight
                pl.BlockSpec((1, cp), lambda i: (0, 0)),      # folded bias
            ],
            out_specs=pl.BlockSpec((tile, cp), lambda i: (i, 0)),
        ),
        compiler_params=pltpu.CompilerParams(
            dimension_semantics=("parallel",),
            vmem_limit_bytes=48 << 20,   # > default scoped limits, < v7x 64 MiB physical
        ),
    )(x_packed, mmat, w_packed, b_packed)

    return out_packed.reshape(n, seq_len, c)


def block_reference(hidden_states, gamma, beta, w_mix, b_mix):
    x = hidden_states.astype(jnp.float32)
    mean = jnp.mean(x, axis=-1, keepdims=True)
    var = jnp.mean((x - mean) ** 2, axis=-1, keepdims=True)
    y = (x - mean) * lax.rsqrt(var + EPS) * gamma + beta
    mix = jnp.einsum("nlc,cd->nld", y, w_mix.astype(jnp.float32)) + b_mix
    return (y + mix).astype(hidden_states.dtype)


if __name__ == "__main__":
    key = jax.random.PRNGKey(0)
    k_x, k_g, k_b, k_w, k_wb = jax.random.split(key, 5)

    # Small shapes consistent with the module: batch=2, h=w=16, dim=32 -> seq = 256.
    N, H, W, C = 2, 16, 16, 32
    L = H * W

    hidden_states = jax.random.normal(k_x, (N, L, C), dtype=jnp.float32)

    # LayerNorm params (nn.LayerNorm(dim) init is ones/zeros; perturb deterministically).
    gamma = 1.0 + 0.1 * jax.random.normal(k_g, (C,), dtype=jnp.float32)
    beta = 0.1 * jax.random.normal(k_b, (C,), dtype=jnp.float32)

    # Mixer (Linear(dim, dim)) params, deterministic.
    # NOTE: weight is used as y @ w_mix; a PyTorch nn.Linear weight (out,in) must be
    #       transposed before being passed in.
    w_mix = 0.05 * jax.random.normal(k_w, (C, C), dtype=jnp.float32)
    b_mix = 0.05 * jax.random.normal(k_wb, (C,), dtype=jnp.float32)

    fwd = jax.jit(partial(block_forward, shape=(H, W)))
    out = fwd(hidden_states, gamma, beta, w_mix, b_mix)
    out = jax.block_until_ready(out)

    ref = block_reference(hidden_states, gamma, beta, w_mix, b_mix)
    assert out.shape == (N, L, C)
    assert jnp.allclose(out, ref, atol=1e-4, rtol=1e-4), "mismatch vs reference"

    print("KERNEL_OK")
</pallas_src>

<mosaic_0001>
module attributes {stable_mosaic.version = 11 : i64} {
  func.func @_block_kernel(%arg0: i32, %arg1: memref<64x128xf32, #tpu.memory_space<vmem>>, %arg2: memref<128x128xf32, #tpu.memory_space<vmem>>, %arg3: memref<128x128xf32, #tpu.memory_space<vmem>>, %arg4: memref<1x128xf32, #tpu.memory_space<vmem>>, %arg5: memref<64x128xf32, #tpu.memory_space<vmem>>) attributes {dimension_semantics = [#tpu.dimension_semantics<parallel>], iteration_bounds = array<i64: 2>, scalar_prefetch = 0 : i64, scratch_operands = 0 : i64, tpu.core_type = #tpu.core_type<tc>, window_params = [{transform_indices = @transform_0, window_bounds = array<i64: 64, 128>}, {pipeline_mode = #tpu.pipeline_mode<synchronous>, transform_indices = @transform_1, window_bounds = array<i64: 128, 128>}, {pipeline_mode = #tpu.pipeline_mode<synchronous>, transform_indices = @transform_2, window_bounds = array<i64: 128, 128>}, {pipeline_mode = #tpu.pipeline_mode<synchronous>, transform_indices = @transform_3, window_bounds = array<i64: 1, 128>}, {transform_indices = @transform_4, window_bounds = array<i64: 64, 128>}]} {
    %c0 = arith.constant 0 : index
    %c0_0 = arith.constant 0 : index
    %0 = vector.load %arg1[%c0, %c0_0] : memref<64x128xf32, #tpu.memory_space<vmem>>, vector<64x128xf32>
    %c0_1 = arith.constant 0 : index
    %c0_2 = arith.constant 0 : index
    %1 = vector.load %arg2[%c0_1, %c0_2] : memref<128x128xf32, #tpu.memory_space<vmem>>, vector<128x128xf32>
    %cst = arith.constant dense<0.000000e+00> : vector<64x128xf32>
    %2 = tpu.matmul %0, %1, %cst {dimension_numbers = #tpu.dot_dimension_numbers<[1], [0], [0], [1], [0, 0, 1, 1], [], []>} : vector<64x128xf32>, vector<128x128xf32>, vector<64x128xf32> -> vector<64x128xf32>
    %3 = arith.mulf %0, %0 : vector<64x128xf32>
    %cst_3 = arith.constant dense<0.000000e+00> : vector<64x128xf32>
    %4 = tpu.matmul %3, %1, %cst_3 {dimension_numbers = #tpu.dot_dimension_numbers<[1], [0], [0], [1], [0, 0, 1, 1], [], []>} : vector<64x128xf32>, vector<128x128xf32>, vector<64x128xf32> -> vector<64x128xf32>
    %5 = arith.mulf %2, %2 : vector<64x128xf32>
    %6 = arith.subf %4, %5 : vector<64x128xf32>
    %cst_4 = arith.constant 0.000000e+00 : f32
    %7 = vector.broadcast %cst_4 : f32 to vector<64x128xf32>
    %8 = arith.maximumf %6, %7 : vector<64x128xf32>
    %9 = arith.subf %0, %2 : vector<64x128xf32>
    %cst_5 = arith.constant 9.99999974E-6 : f32
    %10 = vector.broadcast %cst_5 : f32 to vector<64x128xf32>
    %11 = arith.addf %8, %10 : vector<64x128xf32>
    %12 = math.rsqrt %11 : vector<64x128xf32>
    %13 = arith.mulf %9, %12 : vector<64x128xf32>
    %c0_6 = arith.constant 0 : index
    %c0_7 = arith.constant 0 : index
    %14 = vector.load %arg3[%c0_6, %c0_7] : memref<128x128xf32, #tpu.memory_space<vmem>>, vector<128x128xf32>
    %cst_8 = arith.constant dense<0.000000e+00> : vector<64x128xf32>
    %15 = tpu.matmul %13, %14, %cst_8 {dimension_numbers = #tpu.dot_dimension_numbers<[1], [0], [0], [1], [0, 0, 1, 1], [], []>} : vector<64x128xf32>, vector<128x128xf32>, vector<64x128xf32> -> vector<64x128xf32>
    %c0_9 = arith.constant 0 : index
    %c0_10 = arith.constant 0 : index
    %16 = vector.load %arg4[%c0_9, %c0_10] : memref<1x128xf32, #tpu.memory_space<vmem>>, vector<1x128xf32>
    %17 = vector.broadcast %16 : vector<1x128xf32> to vector<64x128xf32>
    %18 = arith.addf %15, %17 : vector<64x128xf32>
    %c0_11 = arith.constant 0 : index
    %c0_12 = arith.constant 0 : index
    %19 = vector.load %arg5[%c0_11, %c0_12] : memref<64x128xf32, #tpu.memory_space<vmem>>, vector<64x128xf32>
    tpu.vector_store %arg5[%c0_11, %c0_12], %18 {strides = array<i32>} : memref<64x128xf32, #tpu.memory_space<vmem>>, vector<64x128xf32>,
    return
  }
  func.func @transform_0(%arg0: i32) -> (i32, i32) {
    %c0_i32 = arith.constant 0 : i32
    %c0_i32_0 = arith.constant 0 : i32
    return %arg0, %c0_i32 : i32, i32
  }
  func.func @transform_1(%arg0: i32) -> (i32, i32) {
    %c0_i32 = arith.constant 0 : i32
    %c0_i32_0 = arith.constant 0 : i32
    %c0_i32_1 = arith.constant 0 : i32
    return %c0_i32, %c0_i32_0 : i32, i32
  }
  func.func @transform_2(%arg0: i32) -> (i32, i32) {
    %c0_i32 = arith.constant 0 : i32
    %c0_i32_0 = arith.constant 0 : i32
    %c0_i32_1 = arith.constant 0 : i32
    return %c0_i32, %c0_i32_0 : i32, i32
  }
  func.func @transform_3(%arg0: i32) -> (i32, i32) {
    %c0_i32 = arith.constant 0 : i32
    %c0_i32_0 = arith.constant 0 : i32
    %c0_i32_1 = arith.constant 0 : i32
    return %c0_i32, %c0_i32_0 : i32, i32
  }
  func.func @transform_4(%arg0: i32) -> (i32, i32) {
    %c0_i32 = arith.constant 0 : i32
    %c0_i32_0 = arith.constant 0 : i32
    return %arg0, %c0_i32 : i32, i32
  }
}

</mosaic_0001>

<bundles_post_ra>
// kernel: tile.8
= control target key start
LH: loop header
LB: loop body
LE: loop exit
PB: predicated region body
PF: predicated region fallthrough
CT: control target
= control target key end

     0   :  { %s22_s0 = inlined_call_operand.vmem [shape: f32[32], index: 0, kind: input, shape index: {}]   ;;  %s23_s1 = inlined_call_operand.vmem [shape: f32[4,32], index: 1, kind: output, shape index: {}]  }
   0x1   :  { %v4_v0 = vld [vmem:[%s22_s0] ss:$0 sm:$0xff] }
   0x2   :  { %5 = vst [vmem:[%s23_s1] sm:$0xf] %v4_v0 }

// kernel: tile.9
= control target key start
LH: loop header
LB: loop body
LE: loop exit
PB: predicated region body
PF: predicated region fallthrough
CT: control target
= control target key end

     0   :  { %vm7_vm0 = vcmask 261120   ;;  %s37_s8 = smov 32   ;;  %s38_s9 = smov 64   ;;  %vm13_vm1 = vcmask 1048320   ;;  %vm19_vm2 = vcmask 785920   ;;  %vm25_vm3 = vcmask 523520   ;;  %s55_s0 = inlined_call_operand.vmem [shape: f32[4,32], index: 0, kind: input, shape index: {}]   ;;  %s56_s1 = inlined_call_operand.vmem [shape: f32[1,128], index: 1, kind: output, shape index: {}]  }
   0x1   :  { %v4_v0 = vld [vmem:[%s55_s0] sm:$0xf]  ;;  %s36_s0 = smov 96  }
   0x2   :  { %5 = vst [vmem:[#allocation1] sm:$0xf] %v4_v0 }
   0x9   :  { %v10_v1 = vld [vmem:[#allocation1 + $0x3] sm:$0x1]   ;;  %v22_v2 = vld [vmem:[#allocation1 + $0x1] sm:$0x1]   ;;  %v6_v3 = vld [vmem:[#allocation1] sm:$0x1]  }
   0xa   :  { %11 = vrot.lane.b32.xlu0 %v10_v1, %s36_s0  ;;  %23 = vrot.lane.b32.xlu1 %v22_v2, %s37_s8  ;;  %v16_v4 = vld [vmem:[#allocation1 + $0x2] sm:$0x1]   ;;  %8 = vst.msk [vmem:[#allocation0] sm:$0x1] %vm7_vm0, %v6_v3  }
   0xe   :  { %17 = vrot.lane.b32.xlu0 %v16_v4, %s38_s9 }
  0x7c   :  { %v12_v5 = vpop.permute.xlu0 %11   ;;  %v24_v6 = vpop.permute.xlu1 %23  }
  0x7d   :  { %14 = vst.msk [vmem:[#allocation0] sm:$0x1] %vm13_vm1, %v12_v5  }
  0x80   :  { %v18_v7 = vpop.permute.xlu0 %17  }
  0x81   :  { %20 = vst.msk [vmem:[#allocation0] sm:$0x1] %vm19_vm2, %v18_v7  }
  0x82   :  { %26 = vst.msk [vmem:[#allocation0] sm:$0x1] %vm25_vm3, %v24_v6  }
  0x89   :  { %v30_v8 = vld [vmem:[#allocation0] sm:$0x1] }
  0x8a   :  { %32 = vst [vmem:[%s56_s1] sm:$0x1] %v30_v8 }

// kernel: block_forward.1
= control target key start
LH: loop header
LB: loop body
LE: loop exit
PB: predicated region body
PF: predicated region fallthrough
CT: control target
= control target key end

     0   :  { %s1076_s15 = smov 0   ;;  %s1257_s0 = inlined_call_operand.vmem [shape: f32[128,128], index: 0, kind: input, shape index: {}]   ;;  %s1258_s1 = inlined_call_operand.vmem [shape: f32[128,128], index: 1, kind: input, shape index: {}]   ;;  %s1259_s2 = inlined_call_operand.vmem [shape: f32[128,128], index: 2, kind: input, shape index: {}]   ;;  %s1260_s3 = inlined_call_operand.vmem [shape: f32[1,128], index: 3, kind: input, shape index: {}]   ;;  %s1261_s4 = inlined_call_operand.vmem [shape: f32[128,128], index: 4, kind: output, shape index: {}]  }
   0x1 LB: > { %s691_s16 = sadd.s32 4294967295, %s1049_s15   ;;  %p695_p0 = scmp.ge.s32.totalorder %s1049_s15, 1  ;;  %s1049_s15 = sphi %s1076_s15, %s14_s15  }
   0x2   : > { %p163_p1 = scmp.lt.s32.totalorder %s1049_s15, 3 }
   0x4   : > { %p164_p2 = pnand %p695_p0, %p163_p1 }
   0x5   : > { %v209_v0 = vld [vmem:[%s1258_s1] sm:$0xff] (!%p164_p2)  ;;  %v210_v1 = vld [vmem:[%s1258_s1 + $0x8] sm:$0xff] (!%p164_p2)  ;;  %v211_v2 = vld [vmem:[%s1258_s1 + $0x10] sm:$0xff] (!%p164_p2)  ;;  %s696_s23 = sshll.u32 (!%p164_p2), %s691_s16, 3 }
   0x6   : > { %167 = sbr.rel (%p164_p2) target bundleno = 503 (0x1f7), region = 36  ;;  %v907_v3 = vpack.c.bf16 (!%p164_p2), %v210_v1, %v209_v0  ;;  %v212_v4 = vld [vmem:[%s1258_s1 + $0x18] sm:$0xff] (!%p164_p2)  ;;  %p190_p3 = scmp.lt.s32.totalorder (!%p164_p2), %s696_s23, 15  ;;  %v213_v6 = vld [vmem:[%s1258_s1 + $0x20] sm:$0xff] (!%p164_p2)  ;;  %v214_v7 = vld [vmem:[%s1258_s1 + $0x28] sm:$0xff] (!%p164_p2) }
   0x7   : > { %v911_v5 = vpack.c.bf16 (!%p164_p2), %v212_v4, %v211_v2  ;;  %v915_v8 = vpack.c.bf16 (!%p164_p2), %v214_v7, %v213_v6  ;;  %v215_v9 = vld [vmem:[%s1258_s1 + $0x30] sm:$0xff] (!%p164_p2)  ;;  %v216_v10 = vld [vmem:[%s1258_s1 + $0x38] sm:$0xff] (!%p164_p2)  ;;  %v217_v14 = vld [vmem:[%s1258_s1 + $0x40] sm:$0xff] (!%p164_p2) }
   0x8   : > { %908 = vmatprep.subr.bf16.mxu0 (!%p164_p2), %v907_v3  ;;  %940 = vmatprep.subr.bf16.mxu1 (!%p164_p2), %v907_v3  ;;  %v919_v13 = vpack.c.bf16 (!%p164_p2), %v216_v10, %v215_v9  ;;  %v218_v15 = vld [vmem:[%s1258_s1 + $0x48] sm:$0xff] (!%p164_p2)  ;;  %v219_v17 = vld [vmem:[%s1258_s1 + $0x50] sm:$0xff] (!%p164_p2)  ;;  %v220_v18 = vld [vmem:[%s1258_s1 + $0x58] sm:$0xff] (!%p164_p2) }
   0x9   : > { %910 = vmatpush3.bf16.msra.mxu0 (!%p164_p2), %v907_v3  ;;  %942 = vmatpush3.bf16.msra.mxu1 (!%p164_p2), %v907_v3  ;;  %v923_v16 = vpack.c.bf16 (!%p164_p2), %v218_v15, %v217_v14  ;;  %v927_v19 = vpack.c.bf16 (!%p164_p2), %v220_v18, %v219_v17  ;;  %v221_v20 = vld [vmem:[%s1258_s1 + $0x60] sm:$0xff] (!%p164_p2)  ;;  %v222_v21 = vld [vmem:[%s1258_s1 + $0x68] sm:$0xff] (!%p164_p2)  ;;  %v223_v23 = vld [vmem:[%s1258_s1 + $0x70] sm:$0xff] (!%p164_p2) }
   0xa   : > { %912 = vmatprep.subr.bf16.mxu0 (!%p164_p2), %v911_v5  ;;  %944 = vmatprep.subr.bf16.mxu1 (!%p164_p2), %v911_v5  ;;  %v931_v22 = vpack.c.bf16 (!%p164_p2), %v222_v21, %v221_v20  ;;  %v224_v24 = vld [vmem:[%s1258_s1 + $0x78] sm:$0xff] (!%p164_p2)  ;;  %v499_v26 = vld [vmem:[%s1259_s2] sm:$0xff] (!%p164_p2)  ;;  %v500_v27 = vld [vmem:[%s1259_s2 + $0x8] sm:$0xff] (!%p164_p2) }
   0xb   : > { %v935_v25 = vpack.c.bf16 (!%p164_p2), %v224_v24, %v223_v23  ;;  %v971_v30 = vpack.c.bf16 (!%p164_p2), %v500_v27, %v499_v26  ;;  %v501_v32 = vld [vmem:[%s1259_s2 + $0x10] sm:$0xff] (!%p164_p2)  ;;  %v502_v33 = vld [vmem:[%s1259_s2 + $0x18] sm:$0xff] (!%p164_p2)  ;;  %v503_v46 = vld [vmem:[%s1259_s2 + $0x20] sm:$0xff] (!%p164_p2) }
   0xc   : > { %v975_v37 = vpack.c.bf16 (!%p164_p2), %v502_v33, %v501_v32  ;;  %v504_v47 = vld [vmem:[%s1259_s2 + $0x28] sm:$0xff] (!%p164_p2)  ;;  %v505_v49 = vld [vmem:[%s1259_s2 + $0x30] sm:$0xff] (!%p164_p2)  ;;  %v506_v50 = vld [vmem:[%s1259_s2 + $0x38] sm:$0xff] (!%p164_p2) }
   0xd   : > { %s1263_s23 = smov (!%p190_p3, %s696_s23), 15  ;;  %914 = vmatpush3.bf16.msra.mxu0 %v911_v5  ;;  %946 = vmatpush3.bf16.msra.mxu1 %v911_v5  ;;  %v979_v48 = vpack.c.bf16 %v504_v47, %v503_v46  ;;  %v983_v51 = vpack.c.bf16 %v506_v50, %v505_v49  ;;  %v507_v52 = vld [vmem:[%s1259_s2 + $0x40] sm:$0xff]  ;;  %v508_v53 = vld [vmem:[%s1259_s2 + $0x48] sm:$0xff]  ;;  %v509_v55 = vld [vmem:[%s1259_s2 + $0x50] sm:$0xff] }
   0xe   : > { %s697_s30 = sshll.u32 %s1263_s23, 3  ;;  %916 = vmatprep.subr.bf16.mxu0 %v915_v8  ;;  %948 = vmatprep.subr.bf16.mxu1 %v915_v8  ;;  %v987_v54 = vpack.c.bf16 %v508_v53, %v507_v52  ;;  %v510_v56 = vld [vmem:[%s1259_s2 + $0x58] sm:$0xff]  ;;  %v511_v58 = vld [vmem:[%s1259_s2 + $0x60] sm:$0xff]  ;;  %v512_v59 = vld [vmem:[%s1259_s2 + $0x68] sm:$0xff] }
   0xf   : > { %s1116_s11 = scalar_lea.vmem %s1257_s0, %s697_s30  ;;  %v991_v57 = vpack.c.bf16 %v510_v56, %v509_v55  ;;  %v995_v60 = vpack.c.bf16 %v512_v59, %v511_v58  ;;  %v513_v61 = vld [vmem:[%s1259_s2 + $0x70] sm:$0xff]  ;;  %v514_v62 = vld [vmem:[%s1259_s2 + $0x78] sm:$0xff]  ;;  %s199_s19 = scalar_lea.vmem %s1261_s4, %s697_s30 }
  0x10   : > { %v1119_v11 = vld [vmem:[%s1116_s11] sm:$0xff]  ;;  %v1155_v28 = vld [vmem:[%s1116_s11 + $0x8] sm:$0xff]  ;;  %v1158_v29 = vld [vmem:[%s1116_s11 + $0x10] sm:$0xff]  ;;  %v999_v63 = vpack.c.bf16 %v514_v62, %v513_v61 }
  0x11   : > { %v330_v12 = vmul.f32 %v1119_v11, %v1119_v11  ;;  %807 = vmatprep.mubr.f32.mxu0 %v1119_v11  ;;  %918 = vmatpush3.bf16.msra.mxu0 %v915_v8  ;;  %v331_v31 = vmul.f32 %v1155_v28, %v1155_v28  ;;  %v1169_v34 = vld [vmem:[%s1116_s11 + $0x18] sm:$0xff]  ;;  %v332_v35 = vmul.f32 %v1158_v29, %v1158_v29  ;;  %v1174_v36 = vld [vmem:[%s1116_s11 + $0x20] sm:$0xff]  ;;  %v1181_v39 = vld [vmem:[%s1116_s11 + $0x28] sm:$0xff] }
  0x12   : > { %950 = vmatpush3.bf16.msra.mxu1 %v915_v8  ;;  %920 = vmatprep.subr.bf16.mxu0 %v919_v13  ;;  %v333_v38 = vmul.f32 %v1169_v34, %v1169_v34  ;;  %v334_v40 = vmul.f32 %v1174_v36, %v1174_v36  ;;  %v1186_v41 = vld [vmem:[%s1116_s11 + $0x30] sm:$0xff]  ;;  %v335_v42 = vmul.f32 %v1181_v39, %v1181_v39  ;;  %v1193_v43 = vld [vmem:[%s1116_s11 + $0x38] sm:$0xff] }
  0x13   : > { %851 = vmatprep.mubr.f32.mxu1 %v330_v12  ;;  %952 = vmatprep.subr.bf16.mxu1 %v919_v13  ;;  %v336_v44 = vmul.f32 %v1186_v41, %v1186_v41  ;;  %v337_v45 = vmul.f32 %v1193_v43, %v1193_v43 }
  0x15   : > { %922 = vmatpush3.bf16.msra.mxu0 %v919_v13 }
  0x16   : > { %954 = vmatpush3.bf16.msra.mxu1 %v919_v13  ;;  %924 = vmatprep.subr.bf16.mxu0 %v923_v16 }
  0x17   : > { %956 = vmatprep.subr.bf16.mxu1 %v923_v16 }
  0x19   : > { %926 = vmatpush3.bf16.msra.mxu0 %v923_v16 }
  0x1a   : > { %958 = vmatpush3.bf16.msra.mxu1 %v923_v16  ;;  %928 = vmatprep.subr.bf16.mxu0 %v927_v19 }
  0x1b   : > { %960 = vmatprep.subr.bf16.mxu1 %v927_v19 }
  0x1d   : > { %930 = vmatpush3.bf16.msra.mxu0 %v927_v19 }
  0x1e   : > { %962 = vmatpush3.bf16.msra.mxu1 %v927_v19  ;;  %932 = vmatprep.subr.bf16.mxu0 %v931_v22 }
  0x1f   : > { %964 = vmatprep.subr.bf16.mxu1 %v931_v22 }
  0x21   : > { %934 = vmatpush3.bf16.msra.mxu0 %v931_v22 }
  0x22   : > { %966 = vmatpush3.bf16.msra.mxu1 %v931_v22  ;;  %936 = vmatprep.subr.bf16.mxu0 %v935_v25 }
  0x23   : > { %968 = vmatprep.subr.bf16.mxu1 %v935_v25 }
  0x25   : > { %938 = vmatpush3.bf16.msra.mxu0 %v935_v25 }
  0x26   : > { %970 = vmatpush3.bf16.msra.mxu1 %v935_v25  ;;  %972 = vmatprep.subr.bf16.mxu0 %v971_v30 }
  0x27   : > { %1003 = vmatprep.subr.bf16.mxu1 %v971_v30 }
  0x28   : > { %808 = vmatmul.mubr.f32.vlgmr.msra.gmra.mrb[0].mxu0 %v1155_v28 }
  0x29   : > { %852 = vmatmul.mubr.f32.vlgmr.msra.gmra.mrb[0].mxu1 %v331_v31  ;;  %810 = vmatprep.mubr.f32.mxu0 %v1158_v29 }
  0x2a   : > { %854 = vmatprep.mubr.f32.mxu1 %v332_v35  ;;  %974 = vmatpush3.bf16.msra.mxu0 %v971_v30 }
  0x2b   : > { %1011 = vmatpush3.bf16.msra.mxu1 %v971_v30  ;;  %976 = vmatprep.subr.bf16.mxu0 %v975_v37 }
  0x2c   : > { %1004 = vmatprep.subr.bf16.mxu1 %v975_v37  ;;  %811 = vmatmul.mubr.f32.gmra.mrb[2].mxu0 %v1169_v34 }
  0x2d   : > { %855 = vmatmul.mubr.f32.gmra.mrb[2].mxu1 %v333_v38  ;;  %813 = vmatprep.mubr.f32.mxu0 %v1174_v36 }
  0x2e   : > { %857 = vmatprep.mubr.f32.mxu1 %v334_v40  ;;  %978 = vmatpush3.bf16.msra.mxu0 %v975_v37 }
  0x2f   : > { %1012 = vmatpush3.bf16.msra.mxu1 %v975_v37  ;;  %980 = vmatprep.subr.bf16.mxu0 %v979_v48 }
  0x30   : > { %814 = vmatmul.mubr.f32.gmra.mrb[4].mxu0 %v1181_v39  ;;  %1005 = vmatprep.subr.bf16.mxu1 %v979_v48 }
  0x31   : > { %858 = vmatmul.mubr.f32.gmra.mrb[4].mxu1 %v335_v42  ;;  %816 = vmatprep.mubr.f32.mxu0 %v1186_v41 }
  0x32   : > { %860 = vmatprep.mubr.f32.mxu1 %v336_v44  ;;  %982 = vmatpush3.bf16.msra.mxu0 %v979_v48 }
  0x33   : > { %1013 = vmatpush3.bf16.msra.mxu1 %v979_v48  ;;  %984 = vmatprep.subr.bf16.mxu0 %v983_v51 }
  0x34   : > { %817 = vmatmul.mubr.f32.gmra.mrb[6].mxu0 %v1193_v43  ;;  %1006 = vmatprep.subr.bf16.mxu1 %v983_v51 }
  0x35   : > { %861 = vmatmul.mubr.f32.gmra.mrb[6].mxu1 %v337_v45 }
  0x36   : > { %986 = vmatpush3.bf16.msra.mxu0 %v983_v51 }
  0x37   : > { %1014 = vmatpush3.bf16.msra.mxu1 %v983_v51  ;;  %988 = vmatprep.subr.bf16.mxu0 %v987_v54 }
  0x38   : > { %1007 = vmatprep.subr.bf16.mxu1 %v987_v54 }
  0x3a   : > { %990 = vmatpush3.bf16.msra.mxu0 %v987_v54 }
  0x3b   : > { %1015 = vmatpush3.bf16.msra.mxu1 %v987_v54  ;;  %992 = vmatprep.subr.bf16.mxu0 %v991_v57 }
  0x3c   : > { %1008 = vmatprep.subr.bf16.mxu1 %v991_v57 }
  0x3e   : > { %994 = vmatpush3.bf16.msra.mxu0 %v991_v57 }
  0x3f   : > { %1016 = vmatpush3.bf16.msra.mxu1 %v991_v57  ;;  %996 = vmatprep.subr.bf16.mxu0 %v995_v60 }
  0x40   : > { %1009 = vmatprep.subr.bf16.mxu1 %v995_v60 }
  0x42   : > { %998 = vmatpush3.bf16.msra.mxu0 %v995_v60 }
  0x43   : > { %1017 = vmatpush3.bf16.msra.mxu1 %v995_v60  ;;  %1000 = vmatprep.subr.bf16.mxu0 %v999_v63 }
  0x44   : > { %1010 = vmatprep.subr.bf16.mxu1 %v999_v63 }
  0x46   : > { %1002 = vmatpush3.bf16.msra.mxu0 %v999_v63 }
  0x47   : > { %1018 = vmatpush3.bf16.msra.mxu1 %v999_v63 }
  0xfb   : > { %v809_v0 = vpop.f32.mrb[0].mxu0 }
  0xfc   : > { %v853_v1 = vpop.f32.mrb[0].mxu1  ;;  %v444_v2 = vmul.f32 %v809_v0, %v809_v0  ;;  %v291_v3 = vpop.f32.mrb[1].mxu0  ;;  %v468_v53 = vsub.f32 %v1155_v28, %v809_v0 }
  0xfd   : > { %v404_v4 = vpop.f32.mrb[1].mxu1  ;;  %v443_v5 = vmul.f32 %v291_v3, %v291_v3  ;;  %v467_v56 = vsub.f32 %v1119_v11, %v291_v3 }
  0xfe   : > { %v452_v6 = vsub.f32 %v853_v1, %v444_v2 }
  0xff   : > { %v451_v7 = vsub.f32 %v404_v4, %v443_v5  ;;  %v812_v8 = vpop.f32.mrb[2].mxu0 }
 0x100   : > { %v856_v9 = vpop.f32.mrb[2].mxu1  ;;  %v460_v10 = vmax.f32 %v452_v6, 0.0  ;;  %v446_v12 = vmul.f32 %v812_v8, %v812_v8  ;;  %v301_v13 = vpop.f32.mrb[3].mxu0  ;;  %v470_v62 = vsub.f32 %v1169_v34, %v812_v8 }
 0x101   : > { %v414_v14 = vpop.f32.mrb[3].mxu1  ;;  %v459_v15 = vmax.f32 %v451_v7, 0.0  ;;  %v445_v16 = vmul.f32 %v301_v13, %v301_v13  ;;  %v469_v1 = vsub.f32 %v1158_v29, %v301_v13 }
 0x102   : > { %v476_v17 = vadd.f32 1e-05, %v460_v10  ;;  %v454_v18 = vsub.f32 %v856_v9, %v446_v12 }
 0x103   : > { %v475_v19 = vadd.f32 1e-05, %v459_v15  ;;  %v453_v20 = vsub.f32 %v414_v14, %v445_v16  ;;  %v815_v21 = vpop.f32.mrb[4].mxu0 }
 0x104   : > { %v859_v22 = vpop.f32.mrb[4].mxu1  ;;  %1027 = vrsqrt.f32 %v476_v17  ;;  %v462_v23 = vmax.f32 %v454_v18, 0.0  ;;  %v448_v24 = vmul.f32 %v815_v21, %v815_v21  ;;  %v311_v25 = vpop.f32.mrb[5].mxu0  ;;  %v472_v4 = vsub.f32 %v1181_v39, %v815_v21 }
 0x105   : > { %v424_v26 = vpop.f32.mrb[5].mxu1  ;;  %1029 = vrsqrt.f32 %v475_v19  ;;  %v461_v27 = vmax.f32 %v453_v20, 0.0  ;;  %v447_v30 = vmul.f32 %v311_v25, %v311_v25  ;;  %v471_v3 = vsub.f32 %v1174_v36, %v311_v25  ;;  %v700_v36 = vld [vmem:[%s1260_s3] ss:$0 sm:$0xff] }
 0x106   : > { %v478_v31 = vadd.f32 1e-05, %v462_v23  ;;  %v456_v32 = vsub.f32 %v859_v22, %v448_v24 }
 0x107   : > { %v477_v33 = vadd.f32 1e-05, %v461_v27  ;;  %v455_v35 = vsub.f32 %v424_v26, %v447_v30  ;;  %v818_v37 = vpop.f32.mrb[6].mxu0 }
 0x108   : > { %v862_v38 = vpop.f32.mrb[6].mxu1  ;;  %1031 = vrsqrt.f32 %v478_v31  ;;  %v464_v40 = vmax.f32 %v456_v32, 0.0  ;;  %v450_v42 = vmul.f32 %v818_v37, %v818_v37  ;;  %v321_v44 = vpop.f32.mrb[7].mxu0  ;;  %v474_v7 = vsub.f32 %v1193_v43, %v818_v37 }
 0x109   : > { %v434_v45 = vpop.f32.mrb[7].mxu1  ;;  %1033 = vrsqrt.f32 %v477_v33  ;;  %v463_v46 = vmax.f32 %v455_v35, 0.0  ;;  %v449_v47 = vmul.f32 %v321_v44, %v321_v44  ;;  %v473_v29 = vsub.f32 %v1186_v41, %v321_v44 }
 0x10a   : > { %v480_v48 = vadd.f32 1e-05, %v464_v40  ;;  %v458_v49 = vsub.f32 %v862_v38, %v450_v42 }
 0x10b   : > { %v479_v50 = vadd.f32 1e-05, %v463_v46  ;;  %v457_v51 = vsub.f32 %v434_v45, %v449_v47 }
 0x10c   : > { %1035 = vrsqrt.f32 %v480_v48  ;;  %v466_v52 = vmax.f32 %v458_v49, 0.0 }
 0x10d   : > { %1037 = vrsqrt.f32 %v479_v50  ;;  %v465_v54 = vmax.f32 %v457_v51, 0.0 }
 0x10e   : > { %v1028_v55 = vpop.eup %1027  ;;  %v482_v57 = vadd.f32 1e-05, %v466_v52 }
 0x10f   : > { %v1030_v58 = vpop.eup %1029  ;;  %v481_v59 = vadd.f32 1e-05, %v465_v54  ;;  %v492_v60 = vmul.f32 %v1028_v55, %v468_v53 }
 0x110   : > { %1039 = vrsqrt.f32 %v482_v57  ;;  %v491_v61 = vmul.f32 %v1030_v58, %v467_v56 }
 0x111   : > { %1041 = vrsqrt.f32 %v481_v59 }
 0x112   : > { %v1032_v63 = vpop.eup %1031  ;;  %895 = vmatprep.mubr.f32.mxu0 %v491_v61 }
 0x113   : > { %v1034_v2 = vpop.eup %1033  ;;  %896 = vmatmul.mubr.f32.vlgmr.msra.gmra.mrb[8].mxu0 %v492_v60  ;;  %v494_v28 = vmul.f32 %v1032_v63, %v470_v62 }
 0x114   : > { %v493_v0 = vmul.f32 %v1034_v2, %v469_v1 }
 0x116   : > { %v1036_v11 = vpop.eup %1035  ;;  %898 = vmatprep.mubr.f32.mxu0 %v493_v0 }
 0x117   : > { %v1038_v5 = vpop.eup %1037  ;;  %899 = vmatmul.mubr.f32.gmra.mrb[10].mxu0 %v494_v28  ;;  %v496_v6 = vmul.f32 %v1036_v11, %v472_v4 }
 0x118   : > { %v495_v34 = vmul.f32 %v1038_v5, %v471_v3 }
 0x11a   : > { %v1040_v8 = vpop.eup %1039  ;;  %901 = vmatprep.mubr.f32.mxu1 %v495_v34 }
 0x11b   : > { %v1042_v9 = vpop.eup %1041  ;;  %902 = vmatmul.mubr.f32.vlgmr.msra.gmra.mrb[8].mxu1 %v496_v6  ;;  %v498_v10 = vmul.f32 %v1040_v8, %v474_v7 }
 0x11c   : > { %v497_v12 = vmul.f32 %v1042_v9, %v473_v29 }
 0x11e   : > { %904 = vmatprep.mubr.f32.mxu1 %v497_v12 }
 0x11f   : > { %905 = vmatmul.mubr.f32.gmra.mrb[10].mxu1 %v498_v10 }
 0x1e6   : > { %v897_v39 = vpop.f32.mrb[8].mxu0 }
 0x1e7   : > { %v594_v43 = vadd.f32 %v897_v39, %v700_v36  ;;  %v588_v13 = vpop.f32.mrb[9].mxu0 }
 0x1e8   : > { %v589_v41 = vadd.f32 %v700_v36, %v588_v13 }
 0x1e9   : > { %628 = vst [vmem:[%s199_s19 + $0x8] sm:$0xff] %v594_v43 }
 0x1ea   : > { %627 = vst [vmem:[%s199_s19] sm:$0xff] %v589_v41  ;;  %v900_v14 = vpop.f32.mrb[10].mxu0 }
 0x1eb   : > { %v604_v15 = vadd.f32 %v900_v14, %v700_v36  ;;  %v598_v16 = vpop.f32.mrb[11].mxu0 }
 0x1ec   : > { %v599_v17 = vadd.f32 %v700_v36, %v598_v16 }
 0x1ed   : > { %630 = vst [vmem:[%s199_s19 + $0x18] sm:$0xff] %v604_v15 }
 0x1ee   : > { %629 = vst [vmem:[%s199_s19 + $0x10] sm:$0xff] %v599_v17  ;;  %v903_v18 = vpop.f32.mrb[8].mxu1 }
 0x1ef   : > { %v614_v19 = vadd.f32 %v903_v18, %v700_v36  ;;  %v608_v20 = vpop.f32.mrb[9].mxu1 }
 0x1f0   : > { %v609_v21 = vadd.f32 %v700_v36, %v608_v20 }
 0x1f1   : > { %632 = vst [vmem:[%s199_s19 + $0x28] sm:$0xff] %v614_v19 }
 0x1f2   : > { %631 = vst [vmem:[%s199_s19 + $0x20] sm:$0xff] %v609_v21  ;;  %v906_v22 = vpop.f32.mrb[10].mxu1 }
 0x1f3   : > { %v624_v23 = vadd.f32 %v906_v22, %v700_v36  ;;  %v618_v24 = vpop.f32.mrb[11].mxu1 }
 0x1f4   : > { %v619_v25 = vadd.f32 %v700_v36, %v618_v24 }
 0x1f5   : > { %634 = vst [vmem:[%s199_s19 + $0x38] sm:$0xff] %v624_v23 }
 0x1f6   : > { %633 = vst [vmem:[%s199_s19 + $0x30] sm:$0xff] %v619_v25 }
 0x1f7 PF: > { %s14_s15 = sadd.s32 1, %s1049_s15  }
 0x1f8   : > { %p11_p4 = scmp.ge.s32.totalorder %s14_s15, 4  }
 0x1fa   :  { %13 = sbr.rel (!%p11_p4) target bundleno = 1 (0x1), region = 66 }

</bundles_post_ra>
